<compile_context>
chip_gen: v7x
topology: tpu7x:2x2x1
jax: 0.10.0
libtpu: 0.0.40
codegen_flags: <defaults>
</compile_context>

<pallas_src>
import functools

import jax
import jax.numpy as jnp
from jax import lax
from jax.experimental import pallas as pl
from jax.experimental.pallas import tpu as pltpu

_EPS_SQ = 1e-16   # per-vector floor on |v|^2 (matches F.cosine_similarity eps=1e-8
                  # for all non-degenerate inputs; differs only for near-zero vectors)
_NEG_BIG = -1e30  # column mask value for padded columns in the softmax
_TQ = 128         # row (query) tile = one lane-width of output rows


def _angleproto_kernel(w_ref, b_ref, x_ref, loss_ref, logits_ref, anc_sc,
                       *, n_valid, tq):
    i = pl.program_id(0)
    p_total = x_ref.shape[0]          # nPerSpeaker (static)

    # ---- grid step 0: build the normalized anchor once, zero the loss accumulator.
    @pl.when(i == 0)
    def _():
        anc = x_ref[1].astype(jnp.float32)                       # (N_pad, D)
        for p in range(2, p_total):                              # static loop over speakers
            anc = anc + x_ref[p].astype(jnp.float32)
        if p_total > 2:                                          # skip the divide for P == 2
            anc = anc * jnp.float32(1.0 / (p_total - 1))
        inv = lax.rsqrt(jnp.maximum(
            jnp.sum(anc * anc, axis=-1, keepdims=True), _EPS_SQ))
        anc_sc[...] = anc * inv                                  # unit-norm anchors
        loss_ref[...] = jnp.zeros_like(loss_ref)

    # ---- this row tile: normalized positives.
    row0 = pl.multiple_of(i * tq, tq)
    pos = x_ref[0, pl.ds(row0, tq), :].astype(jnp.float32)       # (tq, D)
    inv = lax.rsqrt(jnp.maximum(
        jnp.sum(pos * pos, axis=-1, keepdims=True), _EPS_SQ))
    pos_n = pos * inv                                            # unit-norm positives

    w = w_ref[0]
    b = b_ref[0]

    # Cosine matrix straight off the MXU (contract last dims; no transpose, no divide).
    anc_n = anc_sc[...]                                          # (N_pad, D)
    cos = lax.dot_general(pos_n, anc_n, (((1,), (1,)), ((), ())),
                          preferred_element_type=jnp.float32)    # (tq, N_pad)
    logits = cos * w + b
    logits_ref[...] = logits                                     # lane-dense store

    # Target (diagonal) logits: row g pairs with anchor row g -> elementwise dot.
    anc_tile = anc_sc[pl.ds(row0, tq), :]                        # (tq, D)
    diag = jnp.sum(pos_n * anc_tile, axis=-1, keepdims=True) * w + b   # (tq, 1)

    # Cross entropy with labels = arange(N); mask padded columns / rows.
    col_ids = lax.broadcasted_iota(jnp.int32, (1, logits.shape[-1]), 1)
    masked = jnp.where(col_ids < n_valid, logits, jnp.float32(_NEG_BIG))
    row_max = jnp.max(masked, axis=-1, keepdims=True)
    lse = row_max + jnp.log(
        jnp.sum(jnp.exp(masked - row_max), axis=-1, keepdims=True))     # (tq, 1)
    per_row = lse - diag
    row_ids = lax.broadcasted_iota(jnp.int32, (tq, 1), 0) + row0
    per_row = jnp.where(row_ids < n_valid, per_row, 0.0)

    # Mean reduction folded in (n_valid is static); loss block is resident across the grid.
    loss_ref[...] += jnp.sum(per_row, axis=0, keepdims=True) * jnp.float32(1.0 / n_valid)


def angleproto_forward(x, w, b, n_per_speaker=2):
    """x: (n_per_speaker * N, D), any float dtype.  Returns (loss scalar f32,
    scaled cosine-similarity / logits matrix (N, N) f32)."""
    d = x.shape[-1]
    x3 = jnp.reshape(x, (n_per_speaker, -1, d))          # native dtype, cast inside kernel
    n = x3.shape[1]

    n_pad = ((n + _TQ - 1) // _TQ) * _TQ                 # lane-dense output columns
    if n_pad != n:
        x3 = jnp.pad(x3, ((0, 0), (0, n_pad - n), (0, 0)))
    n_tiles = n_pad // _TQ

    w_arr = jnp.asarray(w, jnp.float32).reshape(1)
    b_arr = jnp.asarray(b, jnp.float32).reshape(1)

    kernel = functools.partial(_angleproto_kernel, n_valid=n, tq=_TQ)

    loss, logits = pl.pallas_call(
        kernel,
        out_shape=(
            jax.ShapeDtypeStruct((1, 1), jnp.float32),           # loss accumulator
            jax.ShapeDtypeStruct((n_pad, n_pad), jnp.float32),   # logits (padded)
        ),
        grid=(n_tiles,),
        in_specs=[
            pl.BlockSpec(memory_space=pltpu.SMEM),               # w (scalar)
            pl.BlockSpec(memory_space=pltpu.SMEM),               # b (scalar)
            pl.BlockSpec((n_per_speaker, n_pad, d),
                         lambda i: (0, 0, 0)),                   # x, resident in VMEM
        ],
        out_specs=(
            pl.BlockSpec((1, 1), lambda i: (0, 0)),              # resident accumulator
            pl.BlockSpec((_TQ, n_pad), lambda i: (i, 0)),        # lane-dense row tile
        ),
        scratch_shapes=[pltpu.VMEM((n_pad, d), jnp.float32)],    # normalized anchor
        compiler_params=pltpu.CompilerParams(
            dimension_semantics=("arbitrary",),                  # loss reduces over row tiles
            vmem_limit_bytes=64 * 1024 * 1024,
        ),
    )(w_arr, b_arr, x3)

    return loss[0, 0], logits[:n, :n]


def _reference_forward(x, w, b, n_per_speaker=2):
    d = x.shape[-1]
    x3 = jnp.reshape(x, (n_per_speaker, -1, d)).astype(jnp.float32)
    pos = x3[0]
    anc = jnp.mean(x3[1:], axis=0)
    dots = pos @ anc.T
    denom = jnp.maximum(
        jnp.linalg.norm(pos, axis=-1, keepdims=True)
        * jnp.linalg.norm(anc, axis=-1, keepdims=True).T, 1e-8)
    logits = dots / denom * w + b
    lse = jax.nn.logsumexp(logits, axis=-1)
    diag = jnp.diagonal(logits)
    loss = jnp.mean(lse - diag)
    return loss, logits


if __name__ == "__main__":
    init_w, init_b = 10.0, -5.0   # module defaults
    key = jax.random.PRNGKey(0)

    # --- case 1: the module's default config (P=2), small N/D -------------------
    n_per_speaker, n_speakers, dim = 2, 8, 32
    k1, k2 = jax.random.split(key)
    x1 = jax.random.normal(k1, (n_per_speaker * n_speakers, dim), dtype=jnp.float32)

    loss1, cos1 = angleproto_forward(x1, init_w, init_b, n_per_speaker)
    loss1 = jax.block_until_ready(loss1)
    cos1 = jax.block_until_ready(cos1)

    ref_loss1, ref_cos1 = _reference_forward(x1, init_w, init_b, n_per_speaker)
    assert cos1.shape == (n_speakers, n_speakers)
    assert jnp.allclose(loss1, ref_loss1, atol=5e-4, rtol=5e-4)
    assert jnp.allclose(cos1, ref_cos1, atol=5e-4, rtol=5e-4)

    # --- case 2: P>2, N not a multiple of 128 (exercises padding + multi-tile) --
    n_per_speaker, n_speakers, dim = 3, 200, 64
    x2 = jax.random.normal(k2, (n_per_speaker * n_speakers, dim), dtype=jnp.float32)

    loss2, cos2 = angleproto_forward(x2, init_w, init_b, n_per_speaker)
    loss2 = jax.block_until_ready(loss2)
    cos2 = jax.block_until_ready(cos2)

    ref_loss2, ref_cos2 = _reference_forward(x2, init_w, init_b, n_per_speaker)
    assert cos2.shape == (n_speakers, n_speakers)
    assert jnp.allclose(loss2, ref_loss2, atol=5e-4, rtol=5e-4)
    assert jnp.allclose(cos2, ref_cos2, atol=5e-4, rtol=5e-4)

    print("KERNEL_OK")
</pallas_src>

<mosaic_0001>
module attributes {stable_mosaic.version = 11 : i64} {
  func.func @_angleproto_kernel(%arg0: i32, %arg1: memref<1xf32, #tpu.memory_space<smem>>, %arg2: memref<1xf32, #tpu.memory_space<smem>>, %arg3: memref<2x128x32xf32, #tpu.memory_space<vmem>>, %arg4: memref<1x1xf32, #tpu.memory_space<vmem>>, %arg5: memref<128x128xf32, #tpu.memory_space<vmem>>, %arg6: memref<128x32xf32, #tpu.memory_space<vmem>>) attributes {dimension_semantics = [#tpu.dimension_semantics<arbitrary>], iteration_bounds = array<i64: 1>, scalar_prefetch = 0 : i64, scratch_operands = 1 : i64, tpu.core_type = #tpu.core_type<tc>, window_params = [{transform_indices = @transform_0, window_bounds = array<i64: 1>}, {transform_indices = @transform_1, window_bounds = array<i64: 1>}, {pipeline_mode = #tpu.pipeline_mode<synchronous>, transform_indices = @transform_2, window_bounds = array<i64: 2, 128, 32>}, {pipeline_mode = #tpu.pipeline_mode<synchronous>, transform_indices = @transform_3, window_bounds = array<i64: 1, 1>}, {transform_indices = @transform_4, window_bounds = array<i64: 128, 128>}]} {
    %c0_i32 = arith.constant 0 : i32
    %0 = arith.cmpi eq, %arg0, %c0_i32 : i32
    %1 = arith.extui %0 : i1 to i32
    %c0_i32_0 = arith.constant 0 : i32
    %2 = arith.cmpi ne, %1, %c0_i32_0 : i32
    scf.if %2 {
      %c1 = arith.constant 1 : index
      %c0_23 = arith.constant 0 : index
      %c0_24 = arith.constant 0 : index
      %65 = vector.load %arg3[%c1, %c0_23, %c0_24] : memref<2x128x32xf32, #tpu.memory_space<vmem>>, vector<1x128x32xf32>
      %66 = vector.shape_cast %65 : vector<1x128x32xf32> to vector<128x32xf32>
      %67 = arith.mulf %66, %66 : vector<128x32xf32>
      %cst_25 = arith.constant dense<0.000000e+00> : vector<128xf32>
      %68 = vector.multi_reduction <add>, %67, %cst_25 [1] : vector<128x32xf32> to vector<128xf32>
      %69 = vector.shape_cast %68 : vector<128xf32> to vector<128x1xf32>
      %cst_26 = arith.constant 1.000000e-16 : f32
      %70 = vector.broadcast %cst_26 : f32 to vector<128x1xf32>
      %71 = arith.maximumf %69, %70 : vector<128x1xf32>
      %72 = math.rsqrt %71 : vector<128x1xf32>
      %73 = vector.broadcast %72 : vector<128x1xf32> to vector<128x32xf32>
      %74 = arith.mulf %66, %73 : vector<128x32xf32>
      %c0_27 = arith.constant 0 : index
      %c0_28 = arith.constant 0 : index
      %75 = vector.load %arg6[%c0_27, %c0_28] : memref<128x32xf32, #tpu.memory_space<vmem>>, vector<128x32xf32>
      tpu.vector_store %arg6[%c0_27, %c0_28], %74 {strides = array<i32>} : memref<128x32xf32, #tpu.memory_space<vmem>>, vector<128x32xf32>,
      %cst_29 = arith.constant 0.000000e+00 : f32
      %76 = vector.broadcast %cst_29 : f32 to vector<1x1xf32>
      %c0_30 = arith.constant 0 : index
      %c0_31 = arith.constant 0 : index
      %77 = vector.load %arg4[%c0_30, %c0_31] : memref<1x1xf32, #tpu.memory_space<vmem>>, vector<1x1xf32>
      tpu.vector_store %arg4[%c0_30, %c0_31], %76 {strides = array<i32>} : memref<1x1xf32, #tpu.memory_space<vmem>>, vector<1x1xf32>,
    } else {
    }
    %c128_i32 = arith.constant 128 : i32
    %3 = arith.muli %arg0, %c128_i32 : i32
    %4 = tpu.assume_multiple %3, 128 : i32
    %c0 = arith.constant 0 : index
    %5 = arith.index_cast %4 : i32 to index
    %c0_1 = arith.constant 0 : index
    %6 = vector.load %arg3[%c0, %5, %c0_1] : memref<2x128x32xf32, #tpu.memory_space<vmem>>, vector<1x128x32xf32>
    %7 = vector.shape_cast %6 : vector<1x128x32xf32> to vector<128x32xf32>
    %8 = arith.mulf %7, %7 : vector<128x32xf32>
    %cst = arith.constant dense<0.000000e+00> : vector<128xf32>
    %9 = vector.multi_reduction <add>, %8, %cst [1] : vector<128x32xf32> to vector<128xf32>
    %10 = vector.shape_cast %9 : vector<128xf32> to vector<128x1xf32>
    %cst_2 = arith.constant 1.000000e-16 : f32
    %11 = vector.broadcast %cst_2 : f32 to vector<128x1xf32>
    %12 = arith.maximumf %10, %11 : vector<128x1xf32>
    %13 = math.rsqrt %12 : vector<128x1xf32>
    %14 = vector.broadcast %13 : vector<128x1xf32> to vector<128x32xf32>
    %15 = arith.mulf %7, %14 : vector<128x32xf32>
    %c0_3 = arith.constant 0 : index
    %16 = memref.load %arg1[%c0_3] : memref<1xf32, #tpu.memory_space<smem>>
    %c0_4 = arith.constant 0 : index
    %17 = memref.load %arg2[%c0_4] : memref<1xf32, #tpu.memory_space<smem>>
    %c0_5 = arith.constant 0 : index
    %c0_6 = arith.constant 0 : index
    %18 = vector.load %arg6[%c0_5, %c0_6] : memref<128x32xf32, #tpu.memory_space<vmem>>, vector<128x32xf32>
    %cst_7 = arith.constant dense<0.000000e+00> : vector<128x128xf32>
    %19 = tpu.matmul %15, %18, %cst_7 {dimension_numbers = #tpu.dot_dimension_numbers<[1], [1], [0], [0], [0, 0, 1, 0], [], []>} : vector<128x32xf32>, vector<128x32xf32>, vector<128x128xf32> -> vector<128x128xf32>
    %20 = vector.broadcast %16 : f32 to vector<128x128xf32>
    %21 = arith.mulf %19, %20 : vector<128x128xf32>
    %22 = vector.broadcast %17 : f32 to vector<128x128xf32>
    %23 = arith.addf %21, %22 : vector<128x128xf32>
    %c0_8 = arith.constant 0 : index
    %c0_9 = arith.constant 0 : index
    %24 = vector.load %arg5[%c0_8, %c0_9] : memref<128x128xf32, #tpu.memory_space<vmem>>, vector<128x128xf32>
    tpu.vector_store %arg5[%c0_8, %c0_9], %23 {strides = array<i32>} : memref<128x128xf32, #tpu.memory_space<vmem>>, vector<128x128xf32>,
    %25 = arith.index_cast %4 : i32 to index
    %c0_10 = arith.constant 0 : index
    %26 = vector.load %arg6[%25, %c0_10] : memref<128x32xf32, #tpu.memory_space<vmem>>, vector<128x32xf32>
    %27 = arith.mulf %15, %26 : vector<128x32xf32>
    %cst_11 = arith.constant dense<0.000000e+00> : vector<128xf32>
    %28 = vector.multi_reduction <add>, %27, %cst_11 [1] : vector<128x32xf32> to vector<128xf32>
    %29 = vector.shape_cast %28 : vector<128xf32> to vector<128x1xf32>
    %30 = vector.broadcast %16 : f32 to vector<128x1xf32>
    %31 = arith.mulf %29, %30 : vector<128x1xf32>
    %32 = vector.broadcast %17 : f32 to vector<128x1xf32>
    %33 = arith.addf %31, %32 : vector<128x1xf32>
    %34 = tpu.iota {dimensions = array<i32: 1>} : vector<1x128xi32>
    %c8_i32 = arith.constant 8 : i32
    %35 = vector.broadcast %c8_i32 : i32 to vector<1x128xi32>
    %36 = arith.cmpi slt, %34, %35 : vector<1x128xi32>
    %cst_12 = arith.constant -1.000000e+30 : f32
    %37 = vector.shape_cast %36 : vector<1x128xi1> to vector<1x128xi1>
    %38 = vector.broadcast %37 : vector<1x128xi1> to vector<128x128xi1>
    %39 = vector.broadcast %cst_12 : f32 to vector<128x128xf32>
    %40 = arith.select %38, %23, %39 : vector<128x128xi1>, vector<128x128xf32>
    %cst_13 = arith.constant dense<0xFF800000> : vector<128xf32>
    %41 = vector.multi_reduction <maximumf>, %40, %cst_13 [1] : vector<128x128xf32> to vector<128xf32>
    %42 = vector.shape_cast %41 : vector<128xf32> to vector<128x1xf32>
    %43 = vector.broadcast %42 : vector<128x1xf32> to vector<128x128xf32>
    %44 = arith.subf %40, %43 : vector<128x128xf32>
    %45 = math.exp %44 : vector<128x128xf32>
    %cst_14 = arith.constant dense<0.000000e+00> : vector<128xf32>
    %46 = vector.multi_reduction <add>, %45, %cst_14 [1] : vector<128x128xf32> to vector<128xf32>
    %47 = vector.shape_cast %46 : vector<128xf32> to vector<128x1xf32>
    %48 = math.log %47 : vector<128x1xf32>
    %49 = arith.addf %42, %48 : vector<128x1xf32>
    %50 = arith.subf %49, %33 : vector<128x1xf32>
    %51 = tpu.iota {dimensions = array<i32: 0>} : vector<128x1xi32>
    %52 = vector.broadcast %4 : i32 to vector<128x1xi32>
    %53 = arith.addi %51, %52 : vector<128x1xi32>
    %c8_i32_15 = arith.constant 8 : i32
    %54 = vector.broadcast %c8_i32_15 : i32 to vector<128x1xi32>
    %55 = arith.cmpi slt, %53, %54 : vector<128x1xi32>
    %cst_16 = arith.constant 0.000000e+00 : f32
    %56 = vector.broadcast %cst_16 : f32 to vector<128x1xf32>
    %57 = arith.select %55, %50, %56 : vector<128x1xi1>, vector<128x1xf32>
    %c0_17 = arith.constant 0 : index
    %c0_18 = arith.constant 0 : index
    %58 = vector.load %arg4[%c0_17, %c0_18] : memref<1x1xf32, #tpu.memory_space<vmem>>, vector<1x1xf32>
    %cst_19 = arith.constant dense<0.000000e+00> : vector<1xf32>
    %59 = vector.multi_reduction <add>, %57, %cst_19 [0] : vector<128x1xf32> to vector<1xf32>
    %60 = vector.shape_cast %59 : vector<1xf32> to vector<1x1xf32>
    %cst_20 = arith.constant 1.250000e-01 : f32
    %61 = vector.broadcast %cst_20 : f32 to vector<1x1xf32>
    %62 = arith.mulf %60, %61 : vector<1x1xf32>
    %63 = arith.addf %58, %62 : vector<1x1xf32>
    %c0_21 = arith.constant 0 : index
    %c0_22 = arith.constant 0 : index
    %64 = vector.load %arg4[%c0_21, %c0_22] : memref<1x1xf32, #tpu.memory_space<vmem>>, vector<1x1xf32>
    tpu.vector_store %arg4[%c0_21, %c0_22], %63 {strides = array<i32>} : memref<1x1xf32, #tpu.memory_space<vmem>>, vector<1x1xf32>,
    return
  }
  func.func @transform_0(%arg0: i32) -> i32 {
    %c0_i32 = arith.constant 0 : i32
    %c0_i32_0 = arith.constant 0 : i32
    return %c0_i32 : i32
  }
  func.func @transform_1(%arg0: i32) -> i32 {
    %c0_i32 = arith.constant 0 : i32
    %c0_i32_0 = arith.constant 0 : i32
    return %c0_i32 : i32
  }
  func.func @transform_2(%arg0: i32) -> (i32, i32, i32) {
    %c0_i32 = arith.constant 0 : i32
    %c0_i32_0 = arith.constant 0 : i32
    %c0_i32_1 = arith.constant 0 : i32
    %c0_i32_2 = arith.constant 0 : i32
    return %c0_i32, %c0_i32_0, %c0_i32_1 : i32, i32, i32
  }
  func.func @transform_3(%arg0: i32) -> (i32, i32) {
    %c0_i32 = arith.constant 0 : i32
    %c0_i32_0 = arith.constant 0 : i32
    %c0_i32_1 = arith.constant 0 : i32
    return %c0_i32, %c0_i32_0 : i32, i32
  }
  func.func @transform_4(%arg0: i32) -> (i32, i32) {
    %c0_i32 = arith.constant 0 : i32
    %c0_i32_0 = arith.constant 0 : i32
    return %arg0, %c0_i32 : i32, i32
  }
}

</mosaic_0001>

<bundles_post_ra>
// kernel: tpu_custom_call.1
= control target key start
LH: loop header
LB: loop body
LE: loop exit
PB: predicated region body
PF: predicated region fallthrough
CT: control target
= control target key end

     0   :  { %12 = vsyncpa [#allocation6], 0  ;;  %s1814_s0 = inlined_call_operand.<no memory space> [shape: f32[1], index: 0, kind: input, shape index: {}]   ;;  %s1815_s1 = inlined_call_operand.<no memory space> [shape: f32[1], index: 1, kind: input, shape index: {}]   ;;  %s1816_s2 = inlined_call_operand.hbm [shape: f32[2,128,32], index: 2, kind: input, shape index: {}]   ;;  %s1817_s3 = inlined_call_operand.hbm [shape: f32[1,1], index: 3, kind: output, shape index: {0}]   ;;  %s1818_s4 = inlined_call_operand.hbm [shape: f32[128,128], index: 4, kind: output, shape index: {1}]  }
   0x1   :  { %13 = vsyncpa [#allocation7], 0 }
   0x2   :  { %14 = vsyncpa [#allocation10], 0  ;;  %s1389_s15 = smov [#allocation5]   ;;  %s1317_s19 = scalar_lea.hbm %s1816_s2, 4096 }
   0x3   :  { %s24_s16 = sshll.u32 %s1389_s15, 4  ;;  %p1318_p0 = scmp.ne.s32.totalorder %s1816_s2, %s1317_s19  ;;  %s25_s16 = int_to_ptr.vmem [resolvable:$true] %s24_s16 }
   0x4   :  { %p1321_p1 = scmp.lt.u32.totalorder %s1317_s19, %s1816_s2 }
   0x6   :  { %p1323_p2 = pnand %p1321_p1, %p1318_p0 }
   0x8   :  { %1326 = shalt.err (!%p1323_p2)
}
   0x9   :  { %s1327_s24 = scalar_lea.vmem %s25_s16, 4096  ;;  %p1332_p4 = scmp.lt.s32.totalorder %s25_s16, %s25_s16 }
   0xa   :  { %p1328_p3 = scmp.ne.s32.totalorder %s25_s16, %s1327_s24  ;;  %p1333_p5 = scmp.lt.s32.totalorder %s1327_s24, %s1327_s24 }
   0xc   :  { %p1334_p6 = por %p1333_p5, %p1332_p4 }
   0xe   :  { %p1335_p7 = pnand %p1334_p6, %p1328_p3 }
  0x10   :  { %1338 = shalt.err (!%p1335_p7)
}
  0x11   :  { %s1390_s25 = smov 128   ;;  %s1391_s26 = smov 8  }
  0x12   :  { %30 = dma.hbm_to_vmem [thread:$0]  %s1816_s2, 4096, %s25_s16, [#allocation6], %s1390_s25, %s1390_s25, %s1391_s26  }
  0x13   :  { %1383 = dma.done.wait [#allocation6], 4096  }
  0x14   :  { %1384 = vsyncadd [#allocation6], 4294963200  ;;  %v1435_v0 = vld [vmem:[#allocation5 + $0x80] sm:$0xff]  ;;  %vm71_vm0 = vcmask 261120   ;;  %v1437_v1 = vld [vmem:[#allocation5 + $0x90] sm:$0xff]  ;;  %vm184_vm3 = vcmask 0  }
  0x15   :  { %v1439_v2 = vld [vmem:[#allocation5 + $0x88] sm:$0xff]  ;;  %v55_v3 = vmul.f32 %v1435_v0, %v1435_v0  ;;  %v57_v4 = vmul.f32 %v1437_v1, %v1437_v1  ;;  %v1447_v6 = vld [vmem:[#allocation5 + $0x98] sm:$0xff]  ;;  %v1451_v8 = vld [vmem:[#allocation5 + $0xa0] sm:$0xff] }
  0x16   :  { %v56_v5 = vmul.f32 %v1439_v2, %v1439_v2  ;;  %v58_v7 = vmul.f32 %v1447_v6, %v1447_v6  ;;  %v1453_v9 = vld [vmem:[#allocation5 + $0xa8] sm:$0xff]  ;;  %v59_v14 = vmul.f32 %v1451_v8, %v1451_v8  ;;  %v1463_v16 = vld [vmem:[#allocation5 + $0xb0] sm:$0xff]  ;;  %v1465_v17 = vld [vmem:[#allocation5 + $0xb8] sm:$0xff] }
  0x17   :  { %v72_v10 = vsel %vm71_vm0, %v55_v3, 0.0  ;;  %v78_v11 = vsel %vm71_vm0, %v57_v4, 0.0  ;;  %v60_v15 = vmul.f32 %v1453_v9, %v1453_v9  ;;  %v61_v19 = vmul.f32 %v1463_v16, %v1463_v16  ;;  %v1473_v22 = vld [vmem:[#allocation5 + $0xc0] sm:$0xff]  ;;  %v1475_v23 = vld [vmem:[#allocation5 + $0xc8] sm:$0xff]  ;;  %v1483_v28 = vld [vmem:[#allocation5 + $0xd0] sm:$0xff] }
  0x18   :  { %73 = vadd.xlane.f32.xlu0 %v72_v10  ;;  %79 = vadd.xlane.f32.xlu1 %v78_v11  ;;  %v75_v12 = vsel %vm71_vm0, %v56_v5, 0.0  ;;  %v81_v13 = vsel %vm71_vm0, %v58_v7, 0.0  ;;  %v84_v18 = vsel %vm71_vm0, %v59_v14, 0.0  ;;  %v62_v21 = vmul.f32 %v1465_v17, %v1465_v17  ;;  %v1485_v29 = vld [vmem:[#allocation5 + $0xd8] sm:$0xff]  ;;  %v1493_v34 = vld [vmem:[#allocation5 + $0xe0] sm:$0xff]  ;;  %v1495_v35 = vld [vmem:[#allocation5 + $0xe8] sm:$0xff] }
  0x19   :  { %v87_v20 = vsel %vm71_vm0, %v60_v15, 0.0  ;;  %v90_v24 = vsel %vm71_vm0, %v61_v19, 0.0  ;;  %v63_v25 = vmul.f32 %v1473_v22, %v1473_v22  ;;  %v64_v27 = vmul.f32 %v1475_v23, %v1475_v23  ;;  %v1503_v40 = vld [vmem:[#allocation5 + $0xf0] sm:$0xff]  ;;  %v1505_v41 = vld [vmem:[#allocation5 + $0xf8] sm:$0xff]  ;;  %v1513_v46 = vld [vmem:[#allocation5] sm:$0xff] }
  0x1a   :  { %v93_v26 = vsel %vm71_vm0, %v62_v21, 0.0  ;;  %v65_v31 = vmul.f32 %v1483_v28, %v1483_v28  ;;  %v66_v33 = vmul.f32 %v1485_v29, %v1485_v29  ;;  %v67_v37 = vmul.f32 %v1493_v34, %v1493_v34  ;;  %v1515_v47 = vld [vmem:[#allocation5 + $0x8] sm:$0xff]  ;;  %v1525_v54 = vld [vmem:[#allocation5 + $0x40] sm:$0xff]  ;;  %v1529_v56 = vld [vmem:[#allocation5 + $0x50] sm:$0xff] }
  0x1b   :  { %v96_v30 = vsel %vm71_vm0, %v63_v25, 0.0  ;;  %v99_v32 = vsel %vm71_vm0, %v64_v27, 0.0  ;;  %v68_v39 = vmul.f32 %v1495_v35, %v1495_v35  ;;  %v69_v43 = vmul.f32 %v1503_v40, %v1503_v40  ;;  %v1527_v55 = vld [vmem:[#allocation5 + $0x48] sm:$0xff]  ;;  %v1537_v60 = vld [vmem:[#allocation5 + $0x10] sm:$0xff]  ;;  %v1541_v62 = vld [vmem:[#allocation5 + $0x58] sm:$0xff] }
  0x1c   :  { %76 = vadd.xlane.f32.xlu0 %v75_v12  ;;  %82 = vadd.xlane.f32.xlu1 %v81_v13  ;;  %v102_v36 = vsel %vm71_vm0, %v65_v31, 0.0  ;;  %v105_v38 = vsel %vm71_vm0, %v66_v33, 0.0  ;;  %v108_v42 = vsel %vm71_vm0, %v67_v37, 0.0  ;;  %v70_v45 = vmul.f32 %v1505_v41, %v1505_v41  ;;  %v1543_v63 = vld [vmem:[#allocation5 + $0x18] sm:$0xff]  ;;  %v1553_v12 = vld [vmem:[#allocation5 + $0x60] sm:$0xff]  ;;  %v1565_v21 = vld [vmem:[#allocation5 + $0x28] sm:$0xff] }
  0x1d   :  { %v111_v44 = vsel %vm71_vm0, %v68_v39, 0.0  ;;  %v114_v48 = vsel %vm71_vm0, %v69_v43, 0.0  ;;  %v204_v49 = vmul.f32 %v1513_v46, %v1513_v46  ;;  %v205_v51 = vmul.f32 %v1515_v47, %v1515_v47  ;;  %v1555_v13 = vld [vmem:[#allocation5 + $0x20] sm:$0xff]  ;;  %v1575_v31 = vld [vmem:[#allocation5 + $0x30] sm:$0xff]  ;;  %v1585_v39 = vld [vmem:[#allocation5 + $0x38] sm:$0xff] }
  0x1e   :  { %v117_v50 = vsel %vm71_vm0, %v70_v45, 0.0  ;;  %v212_v57 = vmul.f32 %v1525_v54, %v1525_v54  ;;  %v213_v58 = vmul.f32 %v1527_v55, %v1527_v55  ;;  %v214_v59 = vmul.f32 %v1529_v56, %v1529_v56  ;;  %vm1613_vm1 = vmpackc.low %vm71_vm0, %vm71_vm0 }
  0x1f   :  { %v221_v52 = vsel %vm71_vm0, %v204_v49, 0.0  ;;  %v224_v53 = vsel %vm71_vm0, %v205_v51, 0.0  ;;  %v206_v61 = vmul.f32 %v1537_v60, %v1537_v60  ;;  %v215_v10 = vmul.f32 %v1541_v62, %v1541_v62 }
  0x20   :  { %85 = vadd.xlane.f32.xlu0 %v84_v18  ;;  %88 = vadd.xlane.f32.xlu1 %v87_v20  ;;  %v245_v3 = vsel %vm71_vm0, %v212_v57, 0.0  ;;  %v248_v4 = vsel %vm71_vm0, %v213_v58, 0.0  ;;  %v251_v5 = vsel %vm71_vm0, %v214_v59, 0.0  ;;  %v207_v11 = vmul.f32 %v1543_v63, %v1543_v63  ;;  %v1563_v20 = vld [vmem:[#allocation5 + $0x68] sm:$0xff] }
  0x21   :  { %v227_v7 = vsel %vm71_vm0, %v206_v61, 0.0  ;;  %v254_v14 = vsel %vm71_vm0, %v215_v10, 0.0  ;;  %v216_v18 = vmul.f32 %v1553_v12, %v1553_v12  ;;  %v208_v19 = vmul.f32 %v1555_v13, %v1555_v13 }
  0x22   :  { %v230_v15 = vsel %vm71_vm0, %v207_v11, 0.0  ;;  %v209_v27 = vmul.f32 %v1565_v21, %v1565_v21  ;;  %v210_v37 = vmul.f32 %v1575_v31, %v1575_v31  ;;  %v211_v45 = vmul.f32 %v1585_v39, %v1585_v39 }
  0x23   :  { %v233_v25 = vsel %vm71_vm0, %v208_v19, 0.0 }
  0x24   :  { %91 = vadd.xlane.f32.xlu0 %v90_v24  ;;  %94 = vadd.xlane.f32.xlu1 %v93_v26  ;;  %v257_v24 = vsel %vm71_vm0, %v216_v18, 0.0  ;;  %v217_v26 = vmul.f32 %v1563_v20, %v1563_v20  ;;  %v236_v33 = vsel %vm71_vm0, %v209_v27, 0.0  ;;  %v239_v43 = vsel %vm71_vm0, %v210_v37, 0.0 }
  0x25   :  { %v242_v49 = vsel %vm71_vm0, %v211_v45, 0.0 }
  0x28   :  { %97 = vadd.xlane.f32.xlu0 %v96_v30  ;;  %100 = vadd.xlane.f32.xlu1 %v99_v32  ;;  %v1573_v30 = vld [vmem:[#allocation5 + $0x70] sm:$0xff]  ;;  %v260_v32 = vsel %vm71_vm0, %v217_v26, 0.0 }
  0x2c   :  { %103 = vadd.xlane.f32.xlu0 %v102_v36  ;;  %106 = vadd.xlane.f32.xlu1 %v105_v38  ;;  %v218_v36 = vmul.f32 %v1573_v30, %v1573_v30  ;;  %v1583_v38 = vld [vmem:[#allocation5 + $0x78] sm:$0xff] }
  0x30   :  { %109 = vadd.xlane.f32.xlu0 %v108_v42  ;;  %112 = vadd.xlane.f32.xlu1 %v111_v44  ;;  %v263_v42 = vsel %vm71_vm0, %v218_v36, 0.0  ;;  %v219_v44 = vmul.f32 %v1583_v38, %v1583_v38 }
  0x34   :  { %115 = vadd.xlane.f32.xlu0 %v114_v48  ;;  %118 = vadd.xlane.f32.xlu1 %v117_v50  ;;  %v266_v48 = vsel %vm71_vm0, %v219_v44, 0.0 }
  0x38   :  { %222 = vadd.xlane.f32.xlu0 %v221_v52  ;;  %225 = vadd.xlane.f32.xlu1 %v224_v53 }
  0x3c   :  { %246 = vadd.xlane.f32.xlu0 %v245_v3  ;;  %249 = vadd.xlane.f32.xlu1 %v248_v4 }
  0x40   :  { %252 = vadd.xlane.f32.xlu1 %v251_v5  ;;  %228 = vadd.xlane.f32.xlu0 %v227_v7 }
  0x44   :  { %255 = vadd.xlane.f32.xlu1 %v254_v14  ;;  %231 = vadd.xlane.f32.xlu0 %v230_v15 }
  0x48   :  { %258 = vadd.xlane.f32.xlu1 %v257_v24  ;;  %234 = vadd.xlane.f32.xlu0 %v233_v25 }
  0x4c   :  { %261 = vadd.xlane.f32.xlu1 %v260_v32  ;;  %237 = vadd.xlane.f32.xlu0 %v236_v33 }
  0x50   :  { %264 = vadd.xlane.f32.xlu1 %v263_v42  ;;  %240 = vadd.xlane.f32.xlu0 %v239_v43 }
  0x54   :  { %267 = vadd.xlane.f32.xlu1 %v266_v48  ;;  %243 = vadd.xlane.f32.xlu0 %v242_v49 }
  0xa5   :  { %v74_v50 = vpop.xlane.xlu0 %73  ;;  %v80_v51 = vpop.xlane.xlu1 %79 }
  0xa6   :  { %v120_v52 = vmax.f32 %v74_v50, 1e-16  ;;  %v122_v53 = vmax.f32 %v80_v51, 1e-16 }
  0xa8   :  { %1249 = vrsqrt.f32 %v120_v52 }
  0xa9   :  { %1251 = vrsqrt.f32 %v122_v53  ;;  %v77_v57 = vpop.xlane.xlu0 %76  ;;  %v83_v58 = vpop.xlane.xlu1 %82 }
  0xaa   :  { %v121_v59 = vmax.f32 %v77_v57, 1e-16  ;;  %v123_v61 = vmax.f32 %v83_v58, 1e-16 }
  0xac   :  { %1253 = vrsqrt.f32 %v121_v59 }
  0xad   :  { %1255 = vrsqrt.f32 %v123_v61  ;;  %v86_v3 = vpop.xlane.xlu0 %85  ;;  %v89_v4 = vpop.xlane.xlu1 %88 }
  0xae   :  { %v124_v5 = vmax.f32 %v86_v3, 1e-16  ;;  %v125_v7 = vmax.f32 %v89_v4, 1e-16 }
  0xb0   :  { %1257 = vrsqrt.f32 %v124_v5 }
  0xb1   :  { %v92_v10 = vpop.xlane.xlu0 %91  ;;  %1259 = vrsqrt.f32 %v125_v7  ;;  %v95_v11 = vpop.xlane.xlu1 %94 }
  0xb2   :  { %v1250_v14 = vpop.eup %1249  ;;  %v126_v15 = vmax.f32 %v92_v10, 1e-16  ;;  %v127_v18 = vmax.f32 %v95_v11, 1e-16 }
  0xb3   :  { %v1252_v19 = vpop.eup %1251  ;;  %v152_v24 = vmul.f32 %v1250_v14, %v1435_v0 }
  0xb4   :  { %v154_v25 = vmul.f32 %v1252_v19, %v1437_v1  ;;  %1261 = vrsqrt.f32 %v126_v15 }
  0xb5   :  { %168 = vst.msk [vmem:[#allocation2] sm:$0xff] %vm71_vm0, %v152_v24  ;;  %v98_v26 = vpop.xlane.xlu0 %97  ;;  %1263 = vrsqrt.f32 %v127_v18  ;;  %v101_v27 = vpop.xlane.xlu1 %100 }
  0xb6   :  { %v1254_v32 = vpop.eup %1253  ;;  %170 = vst.msk [vmem:[#allocation2 + $0x10] sm:$0xff] %vm71_vm0, %v154_v25  ;;  %v128_v33 = vmax.f32 %v98_v26, 1e-16  ;;  %v129_v36 = vmax.f32 %v101_v27, 1e-16 }
  0xb7   :  { %v1256_v37 = vpop.eup %1255  ;;  %v153_v42 = vmul.f32 %v1254_v32, %v1439_v2 }
  0xb8   :  { %v155_v43 = vmul.f32 %v1256_v37, %v1447_v6  ;;  %1265 = vrsqrt.f32 %v128_v33 }
  0xb9   :  { %169 = vst.msk [vmem:[#allocation2 + $0x8] sm:$0xff] %vm71_vm0, %v153_v42  ;;  %v104_v0 = vpop.xlane.xlu0 %103  ;;  %1267 = vrsqrt.f32 %v129_v36  ;;  %v107_v1 = vpop.xlane.xlu1 %106 }
  0xba   :  { %v1258_v44 = vpop.eup %1257  ;;  %171 = vst.msk [vmem:[#allocation2 + $0x18] sm:$0xff] %vm71_vm0, %v155_v43  ;;  %v130_v45 = vmax.f32 %v104_v0, 1e-16  ;;  %v131_v48 = vmax.f32 %v107_v1, 1e-16 }
  0xbb   :  { %v1260_v49 = vpop.eup %1259  ;;  %v156_v50 = vmul.f32 %v1258_v44, %v1451_v8 }
  0xbc   :  { %v157_v51 = vmul.f32 %v1260_v49, %v1453_v9  ;;  %1269 = vrsqrt.f32 %v130_v45  ;;  %v1609_v3 = vld [vmem:[#allocation2] sm:$0xff] }
  0xbd   :  { %172 = vst.msk [vmem:[#allocation2 + $0x20] sm:$0xff] %vm71_vm0, %v156_v50  ;;  %v110_v2 = vpop.xlane.xlu0 %109  ;;  %1271 = vrsqrt.f32 %v131_v48  ;;  %v113_v6 = vpop.xlane.xlu1 %112  ;;  %v321_v61 = vld [vmem:[#allocation2 + $0x10] sm:$0xff] }
  0xbe   :  { %v1262_v52 = vpop.eup %1261  ;;  %173 = vst.msk [vmem:[#allocation2 + $0x28] sm:$0xff] %vm71_vm0, %v157_v51  ;;  %v132_v53 = vmax.f32 %v110_v2, 1e-16  ;;  %v133_v57 = vmax.f32 %v113_v6, 1e-16 }
  0xbf   :  { %v1264_v58 = vpop.eup %1263  ;;  %v158_v59 = vmul.f32 %v1262_v52, %v1463_v16 }
  0xc0   :  { %1273 = vrsqrt.f32 %v132_v53  ;;  %v159_v8 = vmul.f32 %v1264_v58, %v1465_v17  ;;  %v320_v9 = vld [vmem:[#allocation2 + $0x8] sm:$0xff] }
  0xc1   :  { %174 = vst.msk [vmem:[#allocation2 + $0x30] sm:$0xff] %vm71_vm0, %v158_v59  ;;  %v116_v5 = vpop.xlane.xlu0 %115  ;;  %v1179_v7 = vpack.c.bf16 %v320_v9, %v1609_v3  ;;  %v322_v10 = vld [vmem:[#allocation2 + $0x18] sm:$0xff]  ;;  %1275 = vrsqrt.f32 %v133_v57  ;;  %v119_v16 = vpop.xlane.xlu1 %118 }
  0xc2   :  { %v1266_v11 = vpop.eup %1265  ;;  %175 = vst.msk [vmem:[#allocation2 + $0x38] sm:$0xff] %vm71_vm0, %v159_v8  ;;  %v134_v17 = vmax.f32 %v116_v5, 1e-16  ;;  %v1185_v14 = vpack.c.bf16 %v322_v10, %v321_v61  ;;  %v135_v15 = vmax.f32 %v119_v16, 1e-16 }
  0xc3   :  { %v1268_v18 = vpop.eup %1267  ;;  %v160_v19 = vmul.f32 %v1266_v11, %v1473_v22  ;;  %1181 = vmatprep.subr.msk.bf16.mxu0 %vm1613_vm1, %v1179_v7  ;;  %1227 = vmatprep.subr.msk.bf16.mxu1 %vm1613_vm1, %v1179_v7 }
  0xc4   :  { %1277 = vrsqrt.f32 %v134_v17  ;;  %1184 = vmatpush3.bf16.xpose.msk.msra.mxu0 %vm1613_vm1, %v1179_v7  ;;  %1235 = vmatpush3.bf16.xpose.msk.msra.mxu1 %vm1613_vm1, %v1179_v7  ;;  %v161_v24 = vmul.f32 %v1268_v18, %v1475_v23  ;;  %v323_v27 = vld [vmem:[#allocation2 + $0x20] sm:$0xff] }
  0xc5   :  { %176 = vst.msk [vmem:[#allocation2 + $0x40] sm:$0xff] %vm71_vm0, %v160_v19  ;;  %v223_v25 = vpop.xlane.xlu0 %222  ;;  %1187 = vmatprep.subr.msk.bf16.mxu0 %vm1613_vm1, %v1185_v14  ;;  %1228 = vmatprep.subr.msk.bf16.mxu1 %vm1613_vm1, %v1185_v14  ;;  %1279 = vrsqrt.f32 %v135_v15  ;;  %v324_v32 = vld [vmem:[#allocation2 + $0x28] sm:$0xff]  ;;  %v226_v59 = vpop.xlane.xlu1 %225 }
  0xc6   :  { %v1270_v22 = vpop.eup %1269  ;;  %v269_v26 = vmax.f32 %v223_v25, 1e-16  ;;  %177 = vst.msk [vmem:[#allocation2 + $0x48] sm:$0xff] %vm71_vm0, %v161_v24  ;;  %v1191_v37 = vpack.c.bf16 %v324_v32, %v323_v27  ;;  %v270_v61 = vmax.f32 %v226_v59, 1e-16 }
  0xc7   :  { %v1272_v33 = vpop.eup %1271  ;;  %v162_v36 = vmul.f32 %v1270_v22, %v1483_v28 }
  0xc8   :  { %1281 = vrsqrt.f32 %v269_v26  ;;  %v163_v23 = vmul.f32 %v1272_v33, %v1485_v29 }
  0xc9   :  { %178 = vst.msk [vmem:[#allocation2 + $0x50] sm:$0xff] %vm71_vm0, %v162_v36  ;;  %v326_v1 = vld [vmem:[#allocation2 + $0x38] sm:$0xff]  ;;  %1283 = vrsqrt.f32 %v270_v61  ;;  %v247_v10 = vpop.xlane.xlu0 %246  ;;  %v250_v16 = vpop.xlane.xlu1 %249 }
  0xca   :  { %v1274_v42 = vpop.eup %1273  ;;  %179 = vst.msk [vmem:[#allocation2 + $0x58] sm:$0xff] %vm71_vm0, %v163_v23  ;;  %v277_v11 = vmax.f32 %v247_v10, 1e-16  ;;  %v278_v17 = vmax.f32 %v250_v16, 1e-16 }
  0xcb   :  { %v1276_v43 = vpop.eup %1275  ;;  %v164_v0 = vmul.f32 %v1274_v42, %v1493_v34  ;;  %v325_v34 = vld [vmem:[#allocation2 + $0x30] sm:$0xff] }
  0xcc   :  { %1190 = vmatpush3.bf16.xpose.msk.msra.mxu0 %vm1613_vm1, %v1185_v14  ;;  %1236 = vmatpush3.bf16.xpose.msk.msra.mxu1 %vm1613_vm1, %v1185_v14  ;;  %v165_v28 = vmul.f32 %v1276_v43, %v1495_v35  ;;  %v1197_v35 = vpack.c.bf16 %v326_v1, %v325_v34  ;;  %1285 = vrsqrt.f32 %v277_v11 }
  0xcd   :  { %180 = vst.msk [vmem:[#allocation2 + $0x60] sm:$0xff] %vm71_vm0, %v164_v0  ;;  %1193 = vmatprep.subr.msk.bf16.mxu0 %vm1613_vm1, %v1191_v37  ;;  %1229 = vmatprep.subr.msk.bf16.mxu1 %vm1613_vm1, %v1191_v37  ;;  %v328_v51 = vld [vmem:[#allocation2 + $0x48] sm:$0xff]  ;;  %1287 = vrsqrt.f32 %v278_v17  ;;  %v253_v14 = vpop.xlane.xlu1 %252  ;;  %v229_v15 = vpop.xlane.xlu0 %228 }
  0xce   :  { %v1278_v29 = vpop.eup %1277  ;;  %181 = vst.msk [vmem:[#allocation2 + $0x68] sm:$0xff] %vm71_vm0, %v165_v28  ;;  %v279_v18 = vmax.f32 %v253_v14, 1e-16  ;;  %v271_v19 = vmax.f32 %v229_v15, 1e-16 }
  0xcf   :  { %v1280_v44 = vpop.eup %1279  ;;  %v166_v45 = vmul.f32 %v1278_v29, %v1503_v40 }
  0xd0   :  { %v167_v48 = vmul.f32 %v1280_v44, %v1505_v41  ;;  %v327_v41 = vld [vmem:[#allocation2 + $0x40] sm:$0xff]  ;;  %v329_v2 = vld [vmem:[#allocation2 + $0x50] sm:$0xff]  ;;  %1289 = vrsqrt.f32 %v279_v18 }
  0xd1   :  { %182 = vst.msk [vmem:[#allocation2 + $0x70] sm:$0xff] %vm71_vm0, %v166_v45  ;;  %v330_v6 = vld [vmem:[#allocation2 + $0x58] sm:$0xff]  ;;  %1291 = vrsqrt.f32 %v271_v19  ;;  %v256_v24 = vpop.xlane.xlu1 %255  ;;  %v232_v25 = vpop.xlane.xlu0 %231 }
  0xd2   :  { %v1282_v49 = vpop.eup %1281  ;;  %183 = vst.msk [vmem:[#allocation2 + $0x78] sm:$0xff] %vm71_vm0, %v167_v48  ;;  %v1209_v52 = vpack.c.bf16 %v330_v6, %v329_v2  ;;  %v280_v4 = vmax.f32 %v256_v24, 1e-16  ;;  %v272_v22 = vmax.f32 %v232_v25, 1e-16 }
  0xd3   :  { %v301_v50 = vmul.f32 %v1282_v49, %v1513_v46  ;;  %v1203_v46 = vpack.c.bf16 %v328_v51, %v327_v41  ;;  %v1284_v5 = vpop.eup %1283 }
  0xd4   :  { %1196 = vmatpush3.bf16.xpose.msk.msra.mxu0 %vm1613_vm1, %v1191_v37  ;;  %1237 = vmatpush3.bf16.xpose.msk.msra.mxu1 %vm1613_vm1, %v1191_v37  ;;  %v331_v53 = vld [vmem:[#allocation2 + $0x60] sm:$0xff]  ;;  %v302_v7 = vmul.f32 %v1284_v5, %v1515_v47  ;;  %1293 = vrsqrt.f32 %v280_v4 }
  0xd5   :  { %1199 = vmatprep.subr.msk.bf16.mxu0 %vm1613_vm1, %v1197_v35  ;;  %1230 = vmatprep.subr.msk.bf16.mxu1 %vm1613_vm1, %v1197_v35  ;;  %v1666_v40 = vmul.f32 %v1609_v3, %v301_v50  ;;  %v332_v57 = vld [vmem:[#allocation2 + $0x68] sm:$0xff]  ;;  %1295 = vrsqrt.f32 %v272_v22  ;;  %v259_v47 = vpop.xlane.xlu1 %258  ;;  %v235_v26 = vpop.xlane.xlu0 %234 }
  0xd6   :  { %1155 = vmatprep.mubr.msk.f32.mxu0 %vm71_vm0, %v301_v50  ;;  %v1215_v58 = vpack.c.bf16 %v332_v57, %v331_v53  ;;  %v1286_v27 = vpop.eup %1285  ;;  %v281_v32 = vmax.f32 %v259_v47, 1e-16  ;;  %v273_v33 = vmax.f32 %v235_v26, 1e-16 }
  0xd7   :  { %v1288_v36 = vpop.eup %1287  ;;  %v309_v23 = vmul.f32 %v1286_v27, %v1525_v54  ;;  %v659_v14 = vsel %vm71_vm0, %v1666_v40, 0.0 }
  0xd8   :  { %v333_v8 = vld [vmem:[#allocation2 + $0x70] sm:$0xff]  ;;  %1297 = vrsqrt.f32 %v281_v32  ;;  %v310_v37 = vmul.f32 %v1288_v36, %v1527_v55 }
  0xd9   :  { %v334_v3 = vld [vmem:[#allocation2 + $0x78] sm:$0xff]  ;;  %1299 = vrsqrt.f32 %v273_v33  ;;  %1167 = vmatprep.mubr.msk.f32.mxu1 %vm71_vm0, %v309_v23  ;;  %v262_v42 = vpop.xlane.xlu1 %261  ;;  %v238_v43 = vpop.xlane.xlu0 %237 }
  0xda   :  { %v1221_v9 = vpack.c.bf16 %v334_v3, %v333_v8  ;;  %v1290_v0 = vpop.eup %1289  ;;  %v282_v28 = vmax.f32 %v262_v42, 1e-16  ;;  %v274_v29 = vmax.f32 %v238_v43, 1e-16 }
  0xdb   :  { %v1292_v34 = vpop.eup %1291  ;;  %v311_v1 = vmul.f32 %v1290_v0, %v1529_v56 }
  0xdc   :  { %1202 = vmatpush3.bf16.xpose.msk.msra.mxu0 %vm1613_vm1, %v1197_v35  ;;  %1238 = vmatpush3.bf16.xpose.msk.msra.mxu1 %vm1613_vm1, %v1197_v35  ;;  %1301 = vrsqrt.f32 %v282_v28  ;;  %v303_v44 = vmul.f32 %v1292_v34, %v1537_v60 }
  0xdd   :  { %1205 = vmatprep.subr.msk.bf16.mxu0 %vm1613_vm1, %v1203_v46  ;;  %1231 = vmatprep.subr.msk.bf16.mxu1 %vm1613_vm1, %v1203_v46  ;;  %1303 = vrsqrt.f32 %v274_v29  ;;  %v265_v54 = vpop.xlane.xlu1 %264  ;;  %v241_v45 = vpop.xlane.xlu0 %240 }
  0xde   :  { %v1294_v55 = vpop.eup %1293  ;;  %v283_v48 = vmax.f32 %v265_v54, 1e-16  ;;  %v275_v35 = vmax.f32 %v241_v45, 1e-16 }
  0xdf   :  { %v1296_v49 = vpop.eup %1295  ;;  %v312_v50 = vmul.f32 %v1294_v55, %v1541_v62 }
  0xe0   :  { %1305 = vrsqrt.f32 %v283_v48  ;;  %v304_v41 = vmul.f32 %v1296_v49, %v1543_v63 }
  0xe1   :  { %1307 = vrsqrt.f32 %v275_v35  ;;  %v268_v56 = vpop.xlane.xlu1 %267  ;;  %v244_v60 = vpop.xlane.xlu0 %243 }
  0xe2   :  { %v1298_v51 = vpop.eup %1297  ;;  %v276_v2 = vmax.f32 %v244_v60, 1e-16 }
  0xe3   :  { %v1300_v6 = vpop.eup %1299 }
  0xe4   :  { %1208 = vmatpush3.bf16.xpose.msk.msra.mxu0 %vm1613_vm1, %v1203_v46  ;;  %1239 = vmatpush3.bf16.xpose.msk.msra.mxu1 %vm1613_vm1, %v1203_v46  ;;  %v284_v46 = vmax.f32 %v268_v56, 1e-16  ;;  %v305_v53 = vmul.f32 %v1300_v6, %v1555_v13 }
  0xe5   :  { %1211 = vmatprep.subr.msk.bf16.mxu0 %vm1613_vm1, %v1209_v52  ;;  %1232 = vmatprep.subr.msk.bf16.mxu1 %vm1613_vm1, %v1209_v52 }
  0xe6   :  { %1309 = vrsqrt.f32 %v284_v46  ;;  %v1302_v62 = vpop.eup %1301 }
  0xe7   :  { %1311 = vrsqrt.f32 %v276_v2  ;;  %v1304_v63 = vpop.eup %1303  ;;  %v314_v57 = vmul.f32 %v1302_v62, %v1563_v20 }
  0xea   :  { %v1306_v59 = vpop.eup %1305 }
  0xeb   :  { %v315_v61 = vmul.f32 %v1306_v59, %v1573_v30  ;;  %v1738_v30 = vstv %s1814_s0  ;;  %s1393_s0 = smov [#allocation9]  }
  0xec   :  { %1214 = vmatpush3.bf16.xpose.msk.msra.mxu0 %vm1613_vm1, %v1209_v52  ;;  %1240 = vmatpush3.bf16.xpose.msk.msra.mxu1 %vm1613_vm1, %v1209_v52  ;;  %v313_v52 = vmul.f32 %v1298_v51, %v1553_v12  ;;  %v1308_v12 = vpop.eup %1307  ;;  %v1392_v51 = vmov 0.0  }
  0xed   :  { %1217 = vmatprep.subr.msk.bf16.mxu0 %vm1613_vm1, %v1215_v58  ;;  %1233 = vmatprep.subr.msk.bf16.mxu1 %vm1613_vm1, %v1215_v58  ;;  %v307_v13 = vmul.f32 %v1308_v12, %v1575_v31  ;;  %185 = vst.msk [vmem:[#allocation8] sm:$0x1] %vm184_vm3, %v1392_v51 }
  0xf0   :  { %v1310_v8 = vpop.eup %1309 }
  0xf1   :  { %v1312_v3 = vpop.eup %1311  ;;  %v316_v20 = vmul.f32 %v1310_v8, %v1583_v38 }
  0xf4   :  { %1220 = vmatpush3.bf16.xpose.msk.msra.mxu0 %vm1613_vm1, %v1215_v58  ;;  %1241 = vmatpush3.bf16.xpose.msk.msra.mxu1 %vm1613_vm1, %v1215_v58  ;;  %v306_v58 = vmul.f32 %v1304_v63, %v1565_v21  ;;  %v308_v21 = vmul.f32 %v1312_v3, %v1585_v39 }
  0xf5   :  { %1223 = vmatprep.subr.msk.bf16.mxu0 %vm1613_vm1, %v1221_v9  ;;  %1234 = vmatprep.subr.msk.bf16.mxu1 %vm1613_vm1, %v1221_v9 }
  0xfc   :  { %1226 = vmatpush3.bf16.xpose.msk.msra.mxu0 %vm1613_vm1, %v1221_v9  ;;  %1242 = vmatpush3.bf16.xpose.msk.msra.mxu1 %vm1613_vm1, %v1221_v9  ;;  %v739_v9 = vlaneseq }
  0xfe   :  { %v740_v31 = vand.u32 127, %v739_v9 }
 0x100   :  { %vm741_vm2 = vcmp.lt.s32.totalorder %v740_v31, 8 }
 0x103   :  { %1156 = vmatmul.mubr.msk.f32.vlgmr.msra.gmra.mrb[0].mxu0 %vm71_vm0, %v302_v7  ;;  %1168 = vmatmul.mubr.msk.f32.vlgmr.msra.gmra.mrb[0].mxu1 %vm71_vm0, %v310_v37  ;;  %v1743_v7 = vstv %s1815_s1  ;;  %s1043_s1 = sshll.u32 %s1393_s0, 4  ;;  %s1044_s1 = int_to_ptr.vmem [resolvable:$true] %s1043_s1 }
 0x104   :  { %1170 = vmatprep.mubr.msk.f32.mxu1 %vm71_vm0, %v311_v1  ;;  %1158 = vmatprep.mubr.msk.f32.mxu0 %vm71_vm0, %v303_v44  ;;  %s1339_s6 = scalar_lea.vmem %s1044_s1, 2048  ;;  %p1344_p9 = scmp.lt.s32.totalorder %s1044_s1, %s1044_s1 }
 0x105   :  { %p1340_p8 = scmp.ne.s32.totalorder %s1044_s1, %s1339_s6  ;;  %p1345_p10 = scmp.lt.s32.totalorder %s1339_s6, %s1339_s6 }
 0x107   :  { %1171 = vmatmul.mubr.msk.f32.gmra.mrb[2].mxu1 %vm71_vm0, %v312_v50  ;;  %1159 = vmatmul.mubr.msk.f32.gmra.mrb[2].mxu0 %vm71_vm0, %v304_v41  ;;  %p1346_p11 = por %p1345_p10, %p1344_p9 }
 0x108   :  { %1173 = vmatprep.mubr.msk.f32.mxu1 %vm71_vm0, %v313_v52  ;;  %1161 = vmatprep.mubr.msk.f32.mxu0 %vm71_vm0, %v305_v53 }
 0x109   :  { %p1347_p12 = pnand %p1346_p11, %p1340_p8 }
 0x10b   :  { %1174 = vmatmul.mubr.msk.f32.gmra.mrb[4].mxu1 %vm71_vm0, %v314_v57  ;;  %1162 = vmatmul.mubr.msk.f32.gmra.mrb[4].mxu0 %vm71_vm0, %v306_v58 }
 0x10c   :  { %1176 = vmatprep.mubr.msk.f32.mxu1 %vm71_vm0, %v315_v61  ;;  %1164 = vmatprep.mubr.msk.f32.mxu0 %vm71_vm0, %v307_v13 }
 0x10f   :  { %1177 = vmatmul.mubr.msk.f32.gmra.mrb[6].mxu1 %vm71_vm0, %v316_v20  ;;  %1165 = vmatmul.mubr.msk.f32.gmra.mrb[6].mxu0 %vm71_vm0, %v308_v21 }
 0x1d6   :  { %v1157_v5 = vpop.f32.mrb[0].mxu0  ;;  %v1169_v25 = vpop.f32.mrb[0].mxu1 }
 0x1d7   :  { %v578_v38 = vmul.f32 %v1157_v5, %v1738_v30  ;;  %v497_v39 = vpop.f32.mrb[1].mxu0  ;;  %v537_v4 = vpop.f32.mrb[1].mxu1  ;;  %v586_v22 = vmul.f32 %v1169_v25, %v1738_v30 }
 0x1d8   :  { %v577_v10 = vmul.f32 %v1738_v30, %v497_v39  ;;  %v585_v47 = vmul.f32 %v1738_v30, %v537_v4 }
 0x1d9   :  { %v595_v16 = vadd.f32 %v1743_v7, %v578_v38  ;;  %v603_v26 = vadd.f32 %v1743_v7, %v586_v22 }
 0x1da   :  { %v594_v11 = vadd.f32 %v1743_v7, %v577_v10  ;;  %v602_v27 = vadd.f32 %v1743_v7, %v585_v47  ;;  %v1160_v40 = vpop.f32.mrb[2].mxu0  ;;  %v1172_v32 = vpop.f32.mrb[2].mxu1 }
 0x1db   :  { %611 = vst [vmem:[#allocation9 + $0x8] sm:$0xff] %v595_v16  ;;  %619 = vst [vmem:[#allocation9 + $0x48] sm:$0xff] %v603_v26  ;;  %v507_v33 = vpop.f32.mrb[3].mxu0  ;;  %v547_v36 = vpop.f32.mrb[3].mxu1  ;;  %v580_v23 = vmul.f32 %v1160_v40, %v1738_v30  ;;  %v588_v37 = vmul.f32 %v1172_v32, %v1738_v30 }
 0x1dc   :  { %v744_v17 = vsel %vm741_vm2, %v594_v11, -1e+30  ;;  %610 = vst [vmem:[#allocation9] sm:$0xff] %v594_v11  ;;  %618 = vst [vmem:[#allocation9 + $0x40] sm:$0xff] %v602_v27  ;;  %v579_v42 = vmul.f32 %v1738_v30, %v507_v33  ;;  %v587_v43 = vmul.f32 %v1738_v30, %v547_v36 }
 0x1dd   :  { %760 = vmax.xlane.f32.xlu0 %v744_v17  ;;  %v597_v0 = vadd.f32 %v1743_v7, %v580_v23  ;;  %v605_v28 = vadd.f32 %v1743_v7, %v588_v37 }
 0x1de   :  { %v596_v29 = vadd.f32 %v1743_v7, %v579_v42  ;;  %v604_v34 = vadd.f32 %v1743_v7, %v587_v43  ;;  %v1163_v1 = vpop.f32.mrb[4].mxu0  ;;  %v1175_v44 = vpop.f32.mrb[4].mxu1 }
 0x1df   :  { %613 = vst [vmem:[#allocation9 + $0x18] sm:$0xff] %v597_v0  ;;  %621 = vst [vmem:[#allocation9 + $0x58] sm:$0xff] %v605_v28  ;;  %v517_v54 = vpop.f32.mrb[5].mxu0  ;;  %v557_v45 = vpop.f32.mrb[5].mxu1  ;;  %v582_v55 = vmul.f32 %v1163_v1, %v1738_v30  ;;  %v590_v48 = vmul.f32 %v1175_v44, %v1738_v30 }
 0x1e0   :  { %612 = vst [vmem:[#allocation9 + $0x10] sm:$0xff] %v596_v29  ;;  %620 = vst [vmem:[#allocation9 + $0x50] sm:$0xff] %v604_v34  ;;  %v581_v35 = vmul.f32 %v1738_v30, %v517_v54  ;;  %v589_v49 = vmul.f32 %v1738_v30, %v557_v45 }
 0x1e1   :  { %660 = vadd.xlane.f32.xlu0 %v659_v14  ;;  %v599_v50 = vadd.f32 %v1743_v7, %v582_v55  ;;  %v607_v41 = vadd.f32 %v1743_v7, %v590_v48 }
 0x1e2   :  { %v598_v56 = vadd.f32 %v1743_v7, %v581_v35  ;;  %v606_v60 = vadd.f32 %v1743_v7, %v589_v49  ;;  %v1166_v46 = vpop.f32.mrb[6].mxu0  ;;  %v1178_v2 = vpop.f32.mrb[6].mxu1 }
 0x1e3   :  { %615 = vst [vmem:[#allocation9 + $0x28] sm:$0xff] %v599_v50  ;;  %623 = vst [vmem:[#allocation9 + $0x68] sm:$0xff] %v607_v41  ;;  %v584_v6 = vmul.f32 %v1166_v46, %v1738_v30  ;;  %v592_v52 = vmul.f32 %v1178_v2, %v1738_v30  ;;  %v527_v53 = vpop.f32.mrb[7].mxu0  ;;  %v567_v62 = vpop.f32.mrb[7].mxu1 }
 0x1e4   :  { %614 = vst [vmem:[#allocation9 + $0x20] sm:$0xff] %v598_v56  ;;  %622 = vst [vmem:[#allocation9 + $0x60] sm:$0xff] %v606_v60  ;;  %v583_v63 = vmul.f32 %v1738_v30, %v527_v53  ;;  %v591_v57 = vmul.f32 %v1738_v30, %v567_v62 }
 0x1e5   :  { %v601_v58 = vadd.f32 %v1743_v7, %v584_v6  ;;  %v609_v59 = vadd.f32 %v1743_v7, %v592_v52 }
 0x1e6   :  { %v600_v12 = vadd.f32 %v1743_v7, %v583_v63  ;;  %v608_v61 = vadd.f32 %v1743_v7, %v591_v57 }
 0x1e7   :  { %617 = vst [vmem:[#allocation9 + $0x38] sm:$0xff] %v601_v58  ;;  %625 = vst [vmem:[#allocation9 + $0x78] sm:$0xff] %v609_v59 }
 0x1e8   :  { %616 = vst [vmem:[#allocation9 + $0x30] sm:$0xff] %v600_v12  ;;  %624 = vst [vmem:[#allocation9 + $0x70] sm:$0xff] %v608_v61 }
 0x26a   :  { %v1751_v15 = vpop.xlane.xlu0 %760 }
 0x26b   :  { %v792_v18 = vsub.f32 %v744_v17, %v1751_v15 }
 0x26d   :  { %v808_v19 = vmul.f32 1.442695, %v792_v18 }
 0x26f   :  { %1313 = vpow2.f32 %v808_v19 }
 0x279   :  { %v1314_v24 = vpop.eup %1313 }
 0x27a   :  { %840 = vadd.xlane.f32.xlu1 %v1314_v24 }
 0x27b   :  { %1350 = shalt.err (!%p1347_p12)
}
 0x27c   :  { %s1351_s9 = scalar_lea.hbm %s1818_s4, 2048 }
 0x27d   :  { %p1352_p13 = scmp.ne.s32.totalorder %s1818_s4, %s1351_s9  ;;  %p1355_p0 = scmp.lt.u32.totalorder %s1351_s9, %s1818_s4 }
 0x27f   :  { %p1357_p1 = pnand %p1355_p0, %p1352_p13 }
 0x281   :  { %1360 = shalt.err (!%p1357_p1)
}
 0x282   :  { %1049 = dma.vmem_to_hbm [thread:$0]  %s1044_s1, 2048, %s1818_s4, [#allocation10], %s1390_s25, %s1390_s25, %s1391_s26   ;;  %v661_v8 = vpop.xlane.xlu0 %660  ;;  %v1002_v14 = vld [vmem:[#allocation8] sm:$0x1] }
 0x283   :  { %v707_v3 = vmul.f32 %v661_v8, %v1738_v30  ;;  %s1394_s4 = smov [#allocation8]  }
 0x284   :  { %s1034_s16 = sshll.u32 %s1394_s4, 4  ;;  %s1035_s16 = int_to_ptr.vmem [resolvable:$true] %s1034_s16 }
 0x285   :  { %v723_v9 = vadd.f32 %v707_v3, %v1743_v7  ;;  %s1361_s17 = scalar_lea.vmem %s1035_s16, 16  ;;  %s1365_s18 = scalar_lea.vmem %s1035_s16, 32 }
 0x286   :  { %p1362_p2 = scmp.ne.s32.totalorder %s1035_s16, %s1361_s17  ;;  %p1366_p3 = scmp.lt.s32.totalorder %s1035_s16, %s1035_s16 }
 0x287   :  { %p1367_p4 = scmp.lt.s32.totalorder %s1365_s18, %s1361_s17 }
 0x289   :  { %p1368_p5 = por %p1367_p4, %p1366_p3 }
 0x28b   :  { %p1369_p6 = pnand %p1368_p5, %p1362_p2 }
 0x307   :  { %v841_v13 = vpop.xlane.xlu1 %840 }
 0x308   :  { %1315 = vlog2.f32 %v841_v13 }
 0x312   :  { %v1316_v20 = vpop.eup %1315 }
 0x313   :  { %v873_v21 = vmul.f32 0.6931472, %v1316_v20 }
 0x315   :  { %v904_v31 = vadd.f32 %v873_v21, %v1751_v15 }
 0x317   :  { %v920_v5 = vsub.f32 %v904_v31, %v723_v9 }
 0x319   :  { %v1018_v38 = vrot.slane %v920_v5, 4 }
 0x31b   :  { %v1019_v39 = vadd.f32 %v1018_v38, %v920_v5 }
 0x31d   :  { %v1020_v10 = vrot.slane %v1019_v39, 2 }
 0x31f   :  { %v1021_v16 = vadd.f32 %v1020_v10, %v1019_v39 }
 0x321   :  { %v1022_v11 = vrot.slane %v1021_v16, 1 }
 0x323   :  { %v1023_v17 = vadd.f32 %v1022_v11, %v1021_v16 }
 0x325   :  { %v1024_v18 = vmul.f32 0.125, %v1023_v17 }
 0x327   :  { %v1025_v19 = vadd.f32 %v1024_v18, %v1002_v14 }
 0x329   :  { %1027 = vst.msk [vmem:[#allocation8] sm:$0x1] %vm184_vm3, %v1025_v19 }
 0x32a   :  { %1372 = shalt.err (!%p1369_p6)
}
 0x32b   :  { %s1373_s21 = scalar_lea.hbm %s1817_s3, 16 }
 0x32c   :  { %p1374_p7 = scmp.ne.s32.totalorder %s1817_s3, %s1373_s21  ;;  %p1377_p8 = scmp.lt.u32.totalorder %s1373_s21, %s1817_s3 }
 0x32e   :  { %p1379_p9 = pnand %p1377_p8, %p1374_p7 }
 0x330   :  { %1382 = shalt.err (!%p1379_p9)
}
 0x331   :  { %1037 = dma.vmem_to_hbm [thread:$0]  %s1035_s16, 16, %s1817_s3, [#allocation7]  }
 0x332   :  { %1385 = dma.done.wait [#allocation7], 16  }
 0x333   :  { %1386 = vsyncadd [#allocation7], 4294967280 }
 0x334   :  { %1387 = dma.done.wait [#allocation10], 2048  }
 0x335   :  { %1388 = vsyncadd [#allocation10], 4294965248 }
 0x336   :  { %1056 = vsyncpa [#allocation6], 1 }
 0x337   :  { %1057 = vsyncpa [#allocation7], 1 }
 0x338   :  { %1058 = vsyncpa [#allocation10], 1 }

</bundles_post_ra>
